<compile_context>
chip_gen: v6e
topology: v6e:2x2x1
jax: 0.10.0
libtpu: 0.0.40
codegen_flags: <defaults>
</compile_context>

<pallas_src>
import jax
import jax.numpy as jnp
from jax import lax
from jax.experimental import pallas as pl
from jax.experimental.pallas import tpu as pltpu


def lr_kernel(x_ref, w_ref, b_ref, o_ref):
    """One batch tile of the LR hot path.

    x_ref: [F, TB]   int32 *local* per-field indices, batch on the lane axis
    w_ref: [1, K]    f32 field-major padded weight row (K = F * Vf), resident
    b_ref: [1, 1]    f32 bias scalar (SMEM)
    o_ref: [1, TB]   f32 sigmoid(logits), lane-dense
    """
    x = x_ref[...]                                            # [F, TB] int32
    F, TB = x.shape
    K = w_ref.shape[1]
    Vf = K // F

    # Per-field one-hot built directly in the transposed (lane-dense) layout:
    # onehot[f, v, b] = (x[f, b] == v).  Exactly K*TB compares (minimal) —
    # F x fewer than a global one-hot over the concatenated vocabulary.
    iota = lax.broadcasted_iota(jnp.int32, (F, Vf, TB), 1)    # [F, Vf, TB]
    onehot = (x[:, None, :] == iota).astype(jnp.float32)      # [F, Vf, TB]
    onehot2d = onehot.reshape(K, TB)                          # [K, TB]

    # Field/vocab contraction on the MXU: [1, K] @ [K, TB] -> [1, TB].
    logits = jnp.dot(w_ref[...], onehot2d,
                     preferred_element_type=jnp.float32)      # [1, TB]
    logits = logits + b_ref[0, 0]                             # scalar bias
    o_ref[...] = jax.nn.sigmoid(logits)                       # final_activation


def lr_layer(x_idx, weights_flat, bias, vocab_sizes, *, tile_b=256):
    """Pallas wrapper.

    x_idx:        [B, F] int32 global indices into the concatenated vocab
    weights_flat: [1, total_vocab] f32 concatenated 1-dim embedding tables
    bias:         [1, 1] f32
    vocab_sizes:  python list of per-field vocab sizes (len F)
    returns:      [B, 1] f32
    """
    B, F = x_idx.shape
    assert F == len(vocab_sizes)
    vocab_sizes = [int(v) for v in vocab_sizes]
    vf = max(vocab_sizes)
    K = F * vf

    # Per-field offsets into the concatenated vocabulary.
    offsets_py = []
    off = 0
    for vs in vocab_sizes:
        offsets_py.append(off)
        off += vs
    offsets = jnp.asarray(offsets_py, dtype=jnp.int32)

    # Padded, field-major weight row: w_row[0, f*vf + v] = w_flat[offset[f]+v].
    w_flat = weights_flat.reshape(-1).astype(jnp.float32)
    if all(vs == vf for vs in vocab_sizes):
        w_fields = w_flat.reshape(F, vf)                       # fast path
    else:
        w_fields = jnp.zeros((F, vf), dtype=jnp.float32)
        for f, vs in enumerate(vocab_sizes):
            start = offsets_py[f]
            w_fields = w_fields.at[f, :vs].set(w_flat[start:start + vs])
    w_row = w_fields.reshape(1, K)

    # Local (per-field) indices; torch's embedding would have errored on OOB,
    # so inputs are assumed valid.
    x_local = (x_idx - offsets[None, :]).astype(jnp.int32)

    # Pad batch to a tile multiple (pad rows use index 0, sliced off at the end).
    n_tiles = pl.cdiv(B, tile_b)
    Bp = n_tiles * tile_b
    if Bp != B:
        x_local = jnp.pad(x_local, ((0, Bp - B), (0, 0)))
    x_t = x_local.T                                            # [F, Bp]

    bias2d = jnp.reshape(bias, (1, 1)).astype(jnp.float32)

    cost = pl.CostEstimate(
        flops=2 * K * Bp,
        transcendentals=Bp,
        bytes_accessed=4 * (F * Bp + K + Bp + 1),
    )

    out_row = pl.pallas_call(
        lr_kernel,
        out_shape=jax.ShapeDtypeStruct((1, Bp), jnp.float32),
        grid=(n_tiles,),
        in_specs=[
            pl.BlockSpec((F, tile_b), lambda i: (0, i)),         # index tile
            pl.BlockSpec((1, K), lambda i: (0, 0)),              # resident weights
            pl.BlockSpec(memory_space=pltpu.MemorySpace.SMEM),   # scalar bias
        ],
        out_specs=pl.BlockSpec((1, tile_b), lambda i: (0, i)),   # lane-dense out
        compiler_params=pltpu.CompilerParams(
            dimension_semantics=("parallel",),                   # megacore-shardable
            vmem_limit_bytes=32 * 1024 * 1024,
        ),
        cost_estimate=cost,
    )(x_t, w_row, bias2d)

    return out_row[0, :B][:, None]                               # [B, 1]


if __name__ == "__main__":
    key = jax.random.PRNGKey(0)

    # Synthetic "feature_encoder": 8 categorical fields, each with 16 categories.
    batch = 256
    vocab_sizes = [16] * 8
    num_fields = len(vocab_sizes)
    total_vocab = sum(vocab_sizes)          # 128
    offsets = jnp.array(
        [sum(vocab_sizes[:i]) for i in range(num_fields)], dtype=jnp.int32
    )

    k_w, k_x = jax.random.split(key)

    # Embedding dim = 1 -> LR weights; bias = 0 as in nn.Parameter(torch.zeros(1)).
    weights_flat = (
        jax.random.normal(k_w, (1, total_vocab), dtype=jnp.float32) * 0.01
    )
    bias = jnp.zeros((1, 1), dtype=jnp.float32)

    # Per-field raw indices, shifted into the global concatenated vocab.
    raw_idx = jax.random.randint(
        k_x, (batch, num_fields), 0, vocab_sizes[0], dtype=jnp.int32
    )
    x_idx = raw_idx + offsets[None, :]      # [batch, num_fields] global indices

    out = lr_layer(x_idx, weights_flat, bias, vocab_sizes, tile_b=128)
    out = jax.block_until_ready(out)

    # Pure-JAX reference: gather each field's weight, sum over fields, +bias, sigmoid.
    ref = jax.nn.sigmoid(
        jnp.sum(weights_flat[0][x_idx], axis=1, keepdims=True) + bias[0, 0]
    )
    assert out.shape == (batch, 1)
    assert jnp.allclose(out, ref, atol=1e-6), (out, ref)

    print("KERNEL_OK")
</pallas_src>

<mosaic_0001>
module attributes {stable_mosaic.version = 11 : i64} {
  func.func @lr_kernel(%arg0: i32, %arg1: memref<8x128xi32, #tpu.memory_space<vmem>>, %arg2: memref<1x128xf32, #tpu.memory_space<vmem>>, %arg3: memref<1x1xf32, #tpu.memory_space<smem>>, %arg4: memref<1x128xf32, #tpu.memory_space<vmem>>) attributes {dimension_semantics = [#tpu.dimension_semantics<parallel>], iteration_bounds = array<i64: 2>, scalar_prefetch = 0 : i64, scratch_operands = 0 : i64, tpu.core_type = #tpu.core_type<tc>, window_params = [{transform_indices = @transform_0, window_bounds = array<i64: 8, 128>}, {pipeline_mode = #tpu.pipeline_mode<synchronous>, transform_indices = @transform_1, window_bounds = array<i64: 1, 128>}, {transform_indices = @transform_2, window_bounds = array<i64: 1, 1>}, {transform_indices = @transform_3, window_bounds = array<i64: 1, 128>}]} {
    %c0 = arith.constant 0 : index
    %c0_0 = arith.constant 0 : index
    %0 = vector.load %arg1[%c0, %c0_0] : memref<8x128xi32, #tpu.memory_space<vmem>>, vector<8x128xi32>
    %1 = tpu.iota {dimensions = array<i32: 1>} : vector<8x16x128xi32>
    %2 = vector.shape_cast %0 : vector<8x128xi32> to vector<8x1x128xi32>
    %3 = vector.broadcast %2 : vector<8x1x128xi32> to vector<8x16x128xi32>
    %4 = arith.cmpi eq, %3, %1 : vector<8x16x128xi32>
    %5 = arith.extui %4 : vector<8x16x128xi1> to vector<8x16x128xi32>
    %6 = arith.sitofp %5 : vector<8x16x128xi32> to vector<8x16x128xf32>
    %7 = vector.shape_cast %6 : vector<8x16x128xf32> to vector<128x128xf32>
    %c0_1 = arith.constant 0 : index
    %c0_2 = arith.constant 0 : index
    %8 = vector.load %arg2[%c0_1, %c0_2] : memref<1x128xf32, #tpu.memory_space<vmem>>, vector<1x128xf32>
    %cst = arith.constant dense<0.000000e+00> : vector<1x128xf32>
    %9 = tpu.matmul %8, %7, %cst {dimension_numbers = #tpu.dot_dimension_numbers<[1], [0], [0], [1], [0, 0, 1, 1], [], []>} : vector<1x128xf32>, vector<128x128xf32>, vector<1x128xf32> -> vector<1x128xf32>
    %c0_3 = arith.constant 0 : index
    %c0_4 = arith.constant 0 : index
    %10 = memref.load %arg3[%c0_3, %c0_4] : memref<1x1xf32, #tpu.memory_space<smem>>
    %11 = vector.broadcast %10 : f32 to vector<1x128xf32>
    %12 = arith.addf %9, %11 : vector<1x128xf32>
    %13 = arith.negf %12 : vector<1x128xf32>
    %14 = math.exp %13 : vector<1x128xf32>
    %cst_5 = arith.constant 1.000000e+00 : f32
    %15 = vector.broadcast %cst_5 : f32 to vector<1x128xf32>
    %16 = arith.addf %15, %14 : vector<1x128xf32>
    %17 = arith.divf %15, %16 : vector<1x128xf32>
    %c0_6 = arith.constant 0 : index
    %c0_7 = arith.constant 0 : index
    %18 = vector.load %arg4[%c0_6, %c0_7] : memref<1x128xf32, #tpu.memory_space<vmem>>, vector<1x128xf32>
    tpu.vector_store %arg4[%c0_6, %c0_7], %17 {strides = array<i32>} : memref<1x128xf32, #tpu.memory_space<vmem>>, vector<1x128xf32>,
    return
  }
  func.func @transform_0(%arg0: i32) -> (i32, i32) {
    %c0_i32 = arith.constant 0 : i32
    %c0_i32_0 = arith.constant 0 : i32
    return %c0_i32, %arg0 : i32, i32
  }
  func.func @transform_1(%arg0: i32) -> (i32, i32) {
    %c0_i32 = arith.constant 0 : i32
    %c0_i32_0 = arith.constant 0 : i32
    %c0_i32_1 = arith.constant 0 : i32
    return %c0_i32, %c0_i32_0 : i32, i32
  }
  func.func @transform_2(%arg0: i32) -> (i32, i32) {
    %c0_i32 = arith.constant 0 : i32
    %c0_i32_0 = arith.constant 0 : i32
    %c0_i32_1 = arith.constant 0 : i32
    return %c0_i32, %c0_i32_0 : i32, i32
  }
  func.func @transform_3(%arg0: i32) -> (i32, i32) {
    %c0_i32 = arith.constant 0 : i32
    %c0_i32_0 = arith.constant 0 : i32
    return %c0_i32, %arg0 : i32, i32
  }
}

</mosaic_0001>

<bundles_post_ra>
// kernel: tpu_custom_call.1
= control target key start
LH: loop header
LB: loop body
LE: loop exit
PB: predicated region body
PF: predicated region fallthrough
CT: control target
= control target key end

     0   :  { %s932_s0 = inlined_call_operand.hbm [shape: s32[8,256], index: 0, kind: input, shape index: {}]   ;;  %s933_s1 = inlined_call_operand.vmem [shape: f32[1,128], index: 1, kind: input, shape index: {}]   ;;  %s934_s2 = inlined_call_operand.<no memory space> [shape: f32[1,1], index: 2, kind: input, shape index: {}]   ;;  %s935_s3 = inlined_call_operand.hbm [shape: f32[1,256], index: 3, kind: output, shape index: {}]  }
   0x1   :  { %8 = sst [smem:[#allocation2]] %s934_s2 }
   0x2   :  { %9 = vsyncpa [#allocation4], 0 }
   0x3   :  { %11 = vsyncpa [#allocation4 + $0x1], 0 }
   0x4   :  { %12 = vsyncpa [#allocation5], 0 }
   0x5   :  { %14 = vsyncpa [#allocation5 + $0x1], 0  ;;  %s751_s14 = smov 0   ;;  %s753_s15 = smov 0  }
   0x6   :  { %s755_s16 = smov 0   ;;  %s757_s17 = smov 0  }
   0x7 LB: > { %s772_s2 = sadd.s32 4294967295, %s720_s17   ;;  %s478_s18 = sadd.s32 4294967294, %s720_s17   ;;  %s720_s17 = sphi %s757_s17, %s952_s17   ;;  %s716_s16 = sphi %s755_s16, %s951_s16   ;;  %s712_s15 = sphi %s753_s15, %s950_s15   ;;  %s708_s14 = sphi %s751_s14, %s949_s14  }
   0x8   : > { %s776_s19 = sadd.s32 1, %s720_s17   ;;  %s27_s20 = sadd.s32 1, %s716_s16 }
   0x9   : > { %s24_s21 = ssub.s32 %s720_s17, %s776_s19  ;;  %p34_p0 = scmp.ne.s32.totalorder %s716_s16, %s712_s15 }
   0xa   : > { %p25_p1 = scmp.eq.s32.totalorder %s24_s21, 0  ;;  %p35_p2 = scmp.eq.s32.totalorder %s720_s17, 0 }
   0xb   : > { %p40_p3 = scmp.ne.s32.totalorder %s712_s15, %s708_s14  ;;  %p41_p4 = scmp.eq.s32.totalorder %s772_s2, 0 }
   0xc   : > { %s788_s22 = scalar_select %p25_p1, %s716_s16, %s27_s20  }
   0xd   : > { %p790_p5 = por %p35_p2, %p34_p0  ;;  %p794_p6 = por %p41_p4, %p40_p3 }
   0xe   : > { %p106_p7 = scmp.eq.s32.totalorder %s772_s2, 1  ;;  %p112_p8 = scmp.eq.s32.totalorder %s478_s18, 1 }
   0xf   : > { %s939_s24 = scalar_select %p794_p6, 1, 0 }
  0x10   : > { %p585_p10 = scmp.lt.s32.totalorder %s720_s17, 2  ;;  %p801_p11 = por %p106_p7, %p34_p0 }
  0x11   : > { %p805_p12 = por %p112_p8, %p40_p3  ;;  %s138_s27 = sand.u32 1, %s716_s16  }
  0x12   : > { %s940_s25 = scalar_select %p801_p11, 1, 0 }
  0x13   : > { %s941_s26 = scalar_select %p805_p12, 1, 0 }
  0x14   : > { %s482_s28 = sshll.u32 %s720_s17, 7  ;;  %s481_s29 = sshll.u32 %s138_s27, 3 }
  0x15   : > { %s814_s5 = scalar_lea.hbm %s932_s0, %s482_s28  ;;  %s142_s6 = scalar_lea.vmem [#allocation3], %s481_s29 }
  0x16   : > { %s149_s7 = sshll.u32 %s142_s6, 4  ;;  %p818_p13 = pnand %p585_p10, %p790_p5  ;;  %s822_s7 = int_to_ptr.vmem [resolvable:$true] %s149_s7 }
  0x17   : > { %s139_s9 = scalar_lea.sflag [#allocation4], %s138_s27  ;;  %s628_s10 = scalar_lea.hbm %s814_s5, 128 }
  0x18   : > { %p629_p2 = scmp.ne.s32.totalorder %s814_s5, %s628_s10  ;;  %p630_p3 = pneg %p818_p13 }
  0x19   : > { %s633_s13 = scalar_lea.hbm %s932_s0, 256  ;;  %p634_p5 = scmp.lt.s32.totalorder %s814_s5, %s932_s0 }
  0x1a   : > { %p631_p4 = pnand %p630_p3, %p629_p2  ;;  %p635_p8 = scmp.lt.s32.totalorder %s633_s13, %s628_s10 }
  0x1c   : > { %p632_p7 = pneg %p631_p4  ;;  %p636_p10 = por %p635_p8, %p634_p5 }
  0x1e   : > { %p637_p9 = pnand %p636_p10, %p632_p7 }
  0x20   : > { %640 = shalt.err (!%p637_p9)
}
  0x21   : > { %s641_s21 = scalar_lea.vmem %s822_s7, 128  ;;  %s722_s23 = smov [#allocation3]  }
  0x22   : > { %p642_p0 = scmp.ne.s32.totalorder %s822_s7, %s641_s21  ;;  %s646_s27 = sshll.u32 %s722_s23, 4  ;;  %s647_s27 = int_to_ptr.vmem [resolvable:$false] %s646_s27 }
  0x23   : > { %s648_s28 = scalar_lea.vmem %s647_s27, 256  ;;  %p649_p4 = scmp.lt.s32.totalorder %s822_s7, %s647_s27 }
  0x24   : > { %p644_p1 = pnand %p642_p0, %p630_p3  ;;  %p650_p12 = scmp.lt.s32.totalorder %s648_s28, %s641_s21 }
  0x26   : > { %p645_p2 = pneg %p644_p1  ;;  %p651_p11 = por %p650_p12, %p649_p4 }
  0x28   : > { %p652_p6 = pnand %p651_p11, %p645_p2 }
  0x2a   : > { %655 = shalt.err (!%p652_p6)
}
  0x2b   : > { %580 = dma.hbm_to_vmem [thread:$0]  (!%p818_p13), %s814_s5, 128, %s822_s7, %s139_s9  }
  0x2c   : > { %p943_p9 = scmp.lt.s32.totalorder %s720_s17, 3  ;;  %p944_p7 = scmp.ge.s32.totalorder %s720_s17, 1 }
  0x2e   : > { %p155_p0 = pnand %p944_p7, %p943_p9 }
  0x2f   : > { %s849_s29 = sand.u32 (!%p155_p0), 1, %s712_s15   ;;  %p945_p6 = scmp.ne.s32.totalorder (!%p155_p0), %s939_s24, 0 }
  0x30   : > { %158 = sbr.rel (%p155_p0) target bundleno = 343 (0x157), region = 32  ;;  %s484_s30 = sshll.u32 (!%p155_p0), %s849_s29, 3 }
  0x31   : > { %s161_s4 = scalar_lea.sflag (!%p155_p0), [#allocation4], %s849_s29  ;;  %s164_s6 = scalar_lea.vmem (!%p155_p0), [#allocation3], %s484_s30 }
  0x35   : > { %699 = dma.done.wait (%p945_p6), %s161_s4, 128  }
  0x36   : > { %701 = vsyncadd (%p945_p6), %s161_s4, 4294967168  ;;  %v187_v0 = vlaneseq  ;;  %v723_v1 = vmov 0.0   ;;  %v724_v2 = vmov 1966171168   ;;  %vm725_vm0 = vmmov 0   ;;  %v186_v7 = vld [vmem:[%s164_s6] sm:$0xff] }
  0x37   : > { %538 = vmatprep.subr.mxu0 %v723_v1  ;;  %v192_v3 = vunpack.c.l.s4 %v724_v2  ;;  %570 = vmatprep.mubr.msk.f32.mxu0 %vm725_vm0, %v723_v1  ;;  %v190_v8 = vcombine.high %v186_v7, %v186_v7  ;;  %v726_v21 = vmov 1.0   ;;  %v319_v32 = vld [vmem:[%s933_s1] sm:$0x1]  ;;  %s320_s7 = sld [smem:[#allocation2]]  ;;  %s518_s8 = sshll.u32 %s772_s2, 4 }
  0x38   : > { %v858_v4 = vshrl.u32 %v187_v0, 7  ;;  %s185_s9 = scalar_lea.vmem [#allocation6], %s849_s29  ;;  %s895_s13 = scalar_lea.hbm %s935_s3, %s518_s8 }
  0x39   : > { %v193_v5 = vunpack.c.0.s8 %v192_v3  ;;  %s412_s10 = sshll.u32 %s185_s9, 4  ;;  %s400_s18 = scalar_lea.sflag [#allocation5], %s849_s29  ;;  %s413_s10 = int_to_ptr.vmem [resolvable:$true] %s412_s10 }
  0x3a   : > { %v241_v13 = vsub.s32 0, %v858_v4  ;;  %v189_v16 = vadd.s32 8, %v858_v4  ;;  %s656_s20 = scalar_lea.vmem %s413_s10, 16  ;;  %p946_p12 = scmp.ne.s32.totalorder %s940_s25, 0 }
  0x3b   : > { %v196_v6 = vsub.s32 %v193_v5, %v858_v4  ;;  %p657_p11 = scmp.ne.s32.totalorder %s413_s10, %s656_s20  ;;  %s727_s21 = smov [#allocation6]  }
  0x3c   : > { %s660_s23 = sshll.u32 %s727_s21, 4  ;;  %s661_s23 = int_to_ptr.vmem [resolvable:$false] %s660_s23 }
  0x3d   : > { %v204_v9 = vrot.slane %v190_v8, %v196_v6  ;;  %v197_v15 = vrot.slane %v186_v7, %v196_v6  ;;  %v321_v33 = vstv %s320_s7  ;;  %p658_p13 = pnand %p657_p11, %p946_p12  ;;  %s662_s2 = scalar_lea.vmem %s661_s23, 32 }
  0x3e   : > { %p663_p3 = scmp.lt.s32.totalorder %s413_s10, %s661_s23  ;;  %p664_p5 = scmp.lt.s32.totalorder %s662_s2, %s656_s20 }
  0x3f   : > { %v206_v10 = vcombine.high %v204_v9, %v204_v9  ;;  %v220_v11 = vrot.slane %v204_v9, %v196_v6  ;;  %v205_v20 = vcombine.high %v197_v15, %v197_v15  ;;  %v213_v26 = vrot.slane %v197_v15, %v196_v6  ;;  %p659_p1 = pneg %p658_p13 }
  0x40   : > { %p665_p8 = por %p664_p5, %p663_p3 }
  0x41   : > { %v234_v12 = vrot.slane %v206_v10, %v196_v6  ;;  %v236_v14 = vcombine.high %v220_v11, %v220_v11  ;;  %v227_v23 = vrot.slane %v205_v20, %v196_v6  ;;  %v258_v24 = vrot.slane %v220_v11, %v241_v13 }
  0x42   : > { %v235_v28 = vcombine.high %v213_v26, %v213_v26  ;;  %v242_v31 = vrot.slane %v213_v26, %v241_v13  ;;  %p666_p10 = pnand %p665_p8, %p659_p1 }
  0x43   : > { %v238_v17 = vcombine.high %v234_v12, %v234_v12  ;;  %v266_v19 = vrot.slane %v236_v14, %v241_v13  ;;  %v262_v22 = vrot.slane %v234_v12, %v241_v13  ;;  %v237_v25 = vcombine.high %v227_v23, %v227_v23 }
  0x44   : > { %vm280_vm7 = vcmp.eq.s32.totalorder %v258_v24, %v189_v16  ;;  %vm279_vm8 = vcmp.eq.s32.totalorder %v258_v24, %v858_v4  ;;  %v250_v29 = vrot.slane %v235_v28, %v241_v13  ;;  %v246_v30 = vrot.slane %v227_v23, %v241_v13 }
  0x45   : > { %v270_v18 = vrot.slane %v238_v17, %v241_v13  ;;  %vm284_vm3 = vcmp.eq.s32.totalorder %v266_v19, %v189_v16  ;;  %vm283_vm4 = vcmp.eq.s32.totalorder %v266_v19, %v858_v4  ;;  %vm282_vm5 = vcmp.eq.s32.totalorder %v262_v22, %v189_v16 }
  0x46   : > { %vm281_vm6 = vcmp.eq.s32.totalorder %v262_v22, %v858_v4  ;;  %v254_v27 = vrot.slane %v237_v25, %v241_v13  ;;  %vm276_vm11 = vcmp.eq.s32.totalorder %v250_v29, %v189_v16  ;;  %vm275_vm12 = vcmp.eq.s32.totalorder %v250_v29, %v858_v4 }
  0x47   : > { %vm286_vm1 = vcmp.eq.s32.totalorder %v270_v18, %v189_v16  ;;  %vm285_vm2 = vcmp.eq.s32.totalorder %v270_v18, %v858_v4  ;;  %vm274_vm13 = vcmp.eq.s32.totalorder %v246_v30, %v189_v16  ;;  %vm273_vm14 = vcmp.eq.s32.totalorder %v246_v30, %v858_v4 }
  0x48   : > { %539 = vmatpush3.msk.msra.mxu0 %vm286_vm1, %v726_v21  ;;  %vm278_vm9 = vcmp.eq.s32.totalorder %v254_v27, %v189_v16  ;;  %vm277_vm10 = vcmp.eq.s32.totalorder %v254_v27, %v858_v4  ;;  %vm272_vm15 = vcmp.eq.s32.totalorder %v242_v31, %v189_v16  ;;  %vm271_vm0 = vcmp.eq.s32.totalorder %v242_v31, %v858_v4 }
  0x49   : > { %540 = vmatprep.subr.mxu0 %v723_v1 }
  0x4a   : > { %541 = vmatpush3.msk.msra.mxu0 %vm285_vm2, %v726_v21 }
  0x4b   : > { %542 = vmatprep.subr.mxu0 %v723_v1 }
  0x4c   : > { %543 = vmatpush3.msk.msra.mxu0 %vm284_vm3, %v726_v21 }
  0x4d   : > { %544 = vmatprep.subr.mxu0 %v723_v1 }
  0x4e   : > { %545 = vmatpush3.msk.msra.mxu0 %vm283_vm4, %v726_v21 }
  0x4f   : > { %546 = vmatprep.subr.mxu0 %v723_v1 }
  0x50   : > { %547 = vmatpush3.msk.msra.mxu0 %vm282_vm5, %v726_v21 }
  0x51   : > { %548 = vmatprep.subr.mxu0 %v723_v1 }
  0x52   : > { %549 = vmatpush3.msk.msra.mxu0 %vm281_vm6, %v726_v21 }
  0x53   : > { %550 = vmatprep.subr.mxu0 %v723_v1 }
  0x54   : > { %551 = vmatpush3.msk.msra.mxu0 %vm280_vm7, %v726_v21 }
  0x55   : > { %552 = vmatprep.subr.mxu0 %v723_v1 }
  0x56   : > { %553 = vmatpush3.msk.msra.mxu0 %vm279_vm8, %v726_v21 }
  0x57   : > { %554 = vmatprep.subr.mxu0 %v723_v1 }
  0x58   : > { %555 = vmatpush3.msk.msra.mxu0 %vm278_vm9, %v726_v21 }
  0x59   : > { %556 = vmatprep.subr.mxu0 %v723_v1 }
  0x5a   : > { %557 = vmatpush3.msk.msra.mxu0 %vm277_vm10, %v726_v21 }
  0x5b   : > { %558 = vmatprep.subr.mxu0 %v723_v1 }
  0x5c   : > { %559 = vmatpush3.msk.msra.mxu0 %vm276_vm11, %v726_v21 }
  0x5d   : > { %560 = vmatprep.subr.mxu0 %v723_v1 }
  0x5e   : > { %561 = vmatpush3.msk.msra.mxu0 %vm275_vm12, %v726_v21 }
  0x5f   : > { %562 = vmatprep.subr.mxu0 %v723_v1 }
  0x60   : > { %563 = vmatpush3.msk.msra.mxu0 %vm274_vm13, %v726_v21 }
  0x61   : > { %564 = vmatprep.subr.mxu0 %v723_v1 }
  0x62   : > { %565 = vmatpush3.msk.msra.mxu0 %vm273_vm14, %v726_v21 }
  0x63   : > { %566 = vmatprep.subr.mxu0 %v723_v1 }
  0x64   : > { %567 = vmatpush3.msk.msra.mxu0 %vm272_vm15, %v726_v21 }
  0x65   : > { %568 = vmatprep.subr.mxu0 %v723_v1 }
  0x66   : > { %569 = vmatpush3.msk.msra.mxu0 %vm271_vm0, %v726_v21 }
  0x67   : > { %571 = vmatmul.mubr.f32.vlgmr.msra.gmra.mxu0 %v319_v32 }
 0x127   : > { %v388_v34 = vpop.f32.mrf.mxu0 }
 0x128   : > { %v389_v35 = vadd.f32 %v388_v34, %v321_v33 }
 0x129   : > { %v572_v36 = vpop.f32.mrf.mxu0 }
 0x12a   : > { %v517_v37 = vmul.f32 -1.442695, %v389_v35 }
 0x12c   : > { %624 = vpow2.f32 %v517_v37 }
 0x139   : > { %v625_v38 = vpop.eup %624 }
 0x13a   : > { %v395_v39 = vadd.f32 1.0, %v625_v38 }
 0x13c   : > { %626 = vrcp.f32 %v395_v39 }
 0x149   : > { %v627_v40 = vpop.eup %626 }
 0x14a   : > { %398 = vst [vmem:[%s185_s9] sm:$0x1] %v627_v40 }
 0x14b   : > { %669 = shalt.err (!%p666_p10)
}
 0x14c   : > { %s670_s27 = scalar_lea.hbm %s895_s13, 16  ;;  %s674_s30 = scalar_lea.hbm %s935_s3, 32 }
 0x14d   : > { %p671_p2 = scmp.ne.s32.totalorder %s895_s13, %s670_s27  ;;  %p675_p7 = scmp.lt.s32.totalorder %s895_s13, %s935_s3 }
 0x14e   : > { %p676_p0 = scmp.lt.s32.totalorder %s674_s30, %s670_s27 }
 0x14f   : > { %p672_p4 = pnand %p671_p2, %p946_p12 }
 0x150   : > { %p677_p6 = por %p676_p0, %p675_p7 }
 0x151   : > { %p673_p9 = pneg %p672_p4 }
 0x153   : > { %p678_p11 = pnand %p677_p6, %p673_p9 }
 0x155   : > { %681 = shalt.err (!%p678_p11)
}
 0x156   : > { %575 = dma.vmem_to_hbm [thread:$0]  (%p946_p12), %s413_s10, 16, %s895_s13, %s400_s18  }
 0x157 PF: > { %s424_s24 = sand.u32 1, %s708_s14   ;;  %p947_p13 = scmp.ne.s32.totalorder %s941_s26, 0 }
 0x158   : > { %p948_p1 = scmp.ge.s32.totalorder %s720_s17, 2  ;;  %s425_s5 = scalar_lea.sflag [#allocation5], %s424_s24 }
 0x15a   : > { %p582_p3 = pnand %p948_p1, %p947_p13 }
 0x15c   : > { %p583_p5 = pneg %p582_p3 }
 0x15e   : > { %703 = dma.done.wait (%p583_p5), %s425_s5, 16  }
 0x15f   : > { %705 = vsyncadd (%p583_p5), %s425_s5, 4294967280  ;;  %p17_p8 = scmp.ge.s32.totalorder %s776_s19, 4   ;;  %s949_s14 = smov %s712_s15 }
 0x160   : > { %s950_s15 = smov %s716_s16  ;;  %s951_s16 = smov %s788_s22 }
 0x161   : > { %s952_s17 = smov %s776_s19  ;;  %19 = sbr.rel (!%p17_p8) target bundleno = 7 (0x7), region = 77 }
 0x166   :  { %429 = vsyncpa [#allocation4], 1 }
 0x167   :  { %431 = vsyncpa [#allocation4 + $0x1], 1 }
 0x168   :  { %432 = vsyncpa [#allocation5], 1 }
 0x169   :  { %434 = vsyncpa [#allocation5 + $0x1], 1 }

</bundles_post_ra>
